<compile_context>
chip_gen: v7x
topology: tpu7x:2x2x1
jax: 0.10.0
libtpu: 0.0.40
codegen_flags: <defaults>
</compile_context>

<pallas_src>
import functools

import jax
import jax.numpy as jnp
from jax.experimental import pallas as pl
from jax.experimental.pallas import tpu as pltpu

LANE = 128  # TPU lane width: only the hidden dim (16) is padded to this


def _round_up(n, m):
    return ((n + m - 1) // m) * m


def _cdiv(a, b):
    return (a + b - 1) // b


def _device_kind():
    try:
        return jax.devices()[0].device_kind.lower()
    except Exception:
        return ""


_KIND = _device_kind()
_IS_V7X = "v7" in _KIND
# v6e/v7x have a bf16 VPU -> bf16 bias-add/ReLU epilogue; v5e (and unknown) keep f32.
_BF16_EPILOGUE = _IS_V7X or ("v6" in _KIND)
# 1-TC chips: fewer, bigger grid steps (per-step overhead > MXU work for this tiny MLP).
# v7x: smaller cap so large batches split into >=2 balanced tiles across the 2 TensorCores.
_DEFAULT_MAX_TB = 512 if _IS_V7X else 2048


def mlp_policy_kernel(x_ref, w1_ref, b1_ref, w2_ref, b2_ref, w3_ref, b3_ref, o_ref):
    # x_ref: (TB, obs) f32; w1: (obs, 128) bf16; w2: (128, 128) bf16; w3: (128, act) bf16;
    # b1/b2: (1, 128) bf16 (v6e/v7x) or f32 (v5e); b3: (1, act) f32; o_ref: (TB, act) f32.
    # Matmuls run on the MXU with bf16 inputs / f32 accumulation.
    ep_t = b1_ref.dtype                    # epilogue dtype: bf16 on v6e/v7x, f32 on v5e
    x = x_ref[...].astype(jnp.bfloat16)    # in-kernel cast: avoids a wrapper HBM round trip
    h1 = jnp.dot(x, w1_ref[...], preferred_element_type=jnp.float32)
    h1 = jnp.maximum(h1.astype(ep_t) + b1_ref[...], 0.0).astype(jnp.bfloat16)   # ReLU
    h2 = jnp.dot(h1, w2_ref[...], preferred_element_type=jnp.float32)
    h2 = jnp.maximum(h2.astype(ep_t) + b2_ref[...], 0.0).astype(jnp.bfloat16)   # ReLU
    h3 = jnp.dot(h2, w3_ref[...], preferred_element_type=jnp.float32) + b3_ref[...]
    o_ref[...] = jnp.tanh(h3)                                                    # Tanh


def prepare_padded_params(params, obs_space, action_space, hidden=16, bf16_epilogue=None):
    """Pad only the hidden dim to 128 lanes; obs/action dims keep their true size.

    Zero padding is exact for the valid slice: padded hidden columns stay zero through
    bias-add/ReLU, and the padded rows of the following weight contribute nothing.
    """
    if bf16_epilogue is None:
        bf16_epilogue = _BF16_EPILOGUE
    ep = jnp.bfloat16 if bf16_epilogue else jnp.float32

    def pad2(a, rows, cols, dtype):
        out = jnp.zeros((rows, cols), dtype)
        return out.at[: a.shape[0], : a.shape[1]].set(a.astype(dtype))

    hid_p = _round_up(hidden, LANE)
    return {
        "w1": pad2(params["w1"], obs_space, hid_p, jnp.bfloat16),
        "b1": pad2(params["b1"], 1, hid_p, ep),
        "w2": pad2(params["w2"], hid_p, hid_p, jnp.bfloat16),
        "b2": pad2(params["b2"], 1, hid_p, ep),
        "w3": pad2(params["w3"], hid_p, action_space, jnp.bfloat16),
        "b3": pad2(params["b3"], 1, action_space, jnp.float32),
    }


@functools.partial(jax.jit, static_argnames=("max_tb",))
def mlp_policy_forward(x, padded_params, max_tb=None):
    """x: (B, obs_space) f32; padded_params: output of prepare_padded_params.

    NOTE: each distinct B retraces/recompiles the pallas_call; in a hot RL loop, bucket B
    (round up to a small set of fixed sizes) at the call site to keep the fast path hot.
    """
    w1, b1 = padded_params["w1"], padded_params["b1"]
    w2, b2 = padded_params["w2"], padded_params["b2"]
    w3, b3 = padded_params["w3"], padded_params["b3"]

    B, obs = x.shape
    act = w3.shape[1]
    if max_tb is None:
        max_tb = _DEFAULT_MAX_TB

    # Balanced batch tiles: tb only needs to be a multiple of 8 sublanes.
    pB8 = _round_up(max(B, 1), 8)
    n_tiles = _cdiv(pB8, max_tb)
    tb = _round_up(_cdiv(pB8, n_tiles), 8)
    pB = n_tiles * tb

    # x stays narrow f32 (last dim == full array dim -> exempt from the 128-lane rule);
    # only pad batch rows when needed.
    x_p = x if pB == B else jnp.zeros((pB, obs), x.dtype).at[:B].set(x)

    def resident(a):
        # Full-array block with a constant index_map -> loaded once, VMEM-resident
        # across all grid steps (no per-step re-DMA).
        return pl.BlockSpec(a.shape, lambda i: (0, 0))

    out_padded = pl.pallas_call(
        mlp_policy_kernel,
        out_shape=jax.ShapeDtypeStruct((pB, act), jnp.float32),
        grid=(n_tiles,),
        in_specs=[
            pl.BlockSpec((tb, obs), lambda i: (i, 0)),
            resident(w1), resident(b1),
            resident(w2), resident(b2),
            resident(w3), resident(b3),
        ],
        out_specs=pl.BlockSpec((tb, act), lambda i: (i, 0)),
        compiler_params=pltpu.CompilerParams(
            dimension_semantics=("parallel",),  # shards batch tiles across TCs on v7x
        ),
    )(x_p, w1, b1, w2, b2, w3, b3)

    # Slice back to the logical (B, action_space) result (rows only; width is already exact).
    return out_padded[:B]


def init_params(key, obs_space, action_space, hidden=16):
    """Deterministic synthetic parameters (PyTorch Linear shapes, stored transposed)."""
    ks = jax.random.split(key, 6)
    scale = 0.1
    return {
        "w1": scale * jax.random.normal(ks[0], (obs_space, hidden), jnp.float32),
        "b1": scale * jax.random.normal(ks[1], (1, hidden), jnp.float32),
        "w2": scale * jax.random.normal(ks[2], (hidden, hidden), jnp.float32),
        "b2": scale * jax.random.normal(ks[3], (1, hidden), jnp.float32),
        "w3": scale * jax.random.normal(ks[4], (hidden, action_space), jnp.float32),
        "b3": scale * jax.random.normal(ks[5], (1, action_space), jnp.float32),
    }


def reference_forward(x, p):
    h1 = jnp.maximum(x @ p["w1"] + p["b1"], 0.0)
    h2 = jnp.maximum(h1 @ p["w2"] + p["b2"], 0.0)
    return jnp.tanh(h2 @ p["w3"] + p["b3"])


if __name__ == "__main__":
    key = jax.random.PRNGKey(0)
    obs_space, action_space, batch = 8, 4, 2

    kx, kp, kx2 = jax.random.split(key, 3)
    params = init_params(kp, obs_space, action_space)
    padded_params = prepare_padded_params(params, obs_space, action_space, hidden=16)

    # Small batch (matches the original test shapes); single tile, single grid step.
    x = jax.random.normal(kx, (batch, obs_space), jnp.float32)
    out = jax.block_until_ready(mlp_policy_forward(x, padded_params))
    ref = reference_forward(x, params)
    assert out.shape == (batch, action_space)
    # bf16 MXU inputs (f32 accumulate) -> tolerance relaxed vs the pure-f32 version.
    assert jnp.allclose(out, ref, atol=2e-2, rtol=2e-2), "mismatch vs reference (small batch)"

    # Larger batch with a small tile cap: exercises balanced multi-tile grid + row padding
    # (640 rows -> 3 tiles of 216 rows) on every TPU generation.
    x_big = jax.random.normal(kx2, (640, obs_space), jnp.float32)
    out_big = jax.block_until_ready(mlp_policy_forward(x_big, padded_params, max_tb=256))
    ref_big = reference_forward(x_big, params)
    assert out_big.shape == (640, action_space)
    assert jnp.allclose(out_big, ref_big, atol=2e-2, rtol=2e-2), "mismatch vs reference (big batch)"

    print("KERNEL_OK")
</pallas_src>

<mosaic_0001>
module attributes {stable_mosaic.version = 11 : i64} {
  func.func @mlp_policy_kernel(%arg0: i32, %arg1: memref<8x8xf32, #tpu.memory_space<vmem>>, %arg2: memref<8x128xbf16, #tpu.memory_space<vmem>>, %arg3: memref<1x128xf32, #tpu.memory_space<vmem>>, %arg4: memref<128x128xbf16, #tpu.memory_space<vmem>>, %arg5: memref<1x128xf32, #tpu.memory_space<vmem>>, %arg6: memref<128x4xbf16, #tpu.memory_space<vmem>>, %arg7: memref<1x4xf32, #tpu.memory_space<vmem>>, %arg8: memref<8x4xf32, #tpu.memory_space<vmem>>) attributes {dimension_semantics = [#tpu.dimension_semantics<parallel>], iteration_bounds = array<i64: 1>, scalar_prefetch = 0 : i64, scratch_operands = 0 : i64, tpu.core_type = #tpu.core_type<tc>, window_params = [{transform_indices = @transform_0, window_bounds = array<i64: 8, 8>}, {pipeline_mode = #tpu.pipeline_mode<synchronous>, transform_indices = @transform_1, window_bounds = array<i64: 8, 128>}, {pipeline_mode = #tpu.pipeline_mode<synchronous>, transform_indices = @transform_2, window_bounds = array<i64: 1, 128>}, {pipeline_mode = #tpu.pipeline_mode<synchronous>, transform_indices = @transform_3, window_bounds = array<i64: 128, 128>}, {pipeline_mode = #tpu.pipeline_mode<synchronous>, transform_indices = @transform_4, window_bounds = array<i64: 1, 128>}, {pipeline_mode = #tpu.pipeline_mode<synchronous>, transform_indices = @transform_5, window_bounds = array<i64: 128, 4>}, {pipeline_mode = #tpu.pipeline_mode<synchronous>, transform_indices = @transform_6, window_bounds = array<i64: 1, 4>}, {transform_indices = @transform_7, window_bounds = array<i64: 8, 4>}]} {
    %c0 = arith.constant 0 : index
    %c0_0 = arith.constant 0 : index
    %0 = vector.load %arg1[%c0, %c0_0] : memref<8x8xf32, #tpu.memory_space<vmem>>, vector<8x8xf32>
    %1 = arith.truncf %0 : vector<8x8xf32> to vector<8x8xbf16>
    %c0_1 = arith.constant 0 : index
    %c0_2 = arith.constant 0 : index
    %2 = vector.load %arg2[%c0_1, %c0_2] : memref<8x128xbf16, #tpu.memory_space<vmem>>, vector<8x128xbf16>
    %cst = arith.constant dense<0.000000e+00> : vector<8x128xf32>
    %3 = tpu.matmul %1, %2, %cst {dimension_numbers = #tpu.dot_dimension_numbers<[1], [0], [0], [1], [0, 0, 1, 1], [], []>} : vector<8x8xbf16>, vector<8x128xbf16>, vector<8x128xf32> -> vector<8x128xf32>
    %c0_3 = arith.constant 0 : index
    %c0_4 = arith.constant 0 : index
    %4 = vector.load %arg3[%c0_3, %c0_4] : memref<1x128xf32, #tpu.memory_space<vmem>>, vector<1x128xf32>
    %5 = vector.broadcast %4 : vector<1x128xf32> to vector<8x128xf32>
    %6 = arith.addf %3, %5 : vector<8x128xf32>
    %cst_5 = arith.constant 0.000000e+00 : f32
    %7 = vector.broadcast %cst_5 : f32 to vector<8x128xf32>
    %8 = arith.maximumf %6, %7 : vector<8x128xf32>
    %9 = arith.truncf %8 : vector<8x128xf32> to vector<8x128xbf16>
    %c0_6 = arith.constant 0 : index
    %c0_7 = arith.constant 0 : index
    %10 = vector.load %arg4[%c0_6, %c0_7] : memref<128x128xbf16, #tpu.memory_space<vmem>>, vector<128x128xbf16>
    %cst_8 = arith.constant dense<0.000000e+00> : vector<8x128xf32>
    %11 = tpu.matmul %9, %10, %cst_8 {dimension_numbers = #tpu.dot_dimension_numbers<[1], [0], [0], [1], [0, 0, 1, 1], [], []>} : vector<8x128xbf16>, vector<128x128xbf16>, vector<8x128xf32> -> vector<8x128xf32>
    %c0_9 = arith.constant 0 : index
    %c0_10 = arith.constant 0 : index
    %12 = vector.load %arg5[%c0_9, %c0_10] : memref<1x128xf32, #tpu.memory_space<vmem>>, vector<1x128xf32>
    %13 = vector.broadcast %12 : vector<1x128xf32> to vector<8x128xf32>
    %14 = arith.addf %11, %13 : vector<8x128xf32>
    %cst_11 = arith.constant 0.000000e+00 : f32
    %15 = vector.broadcast %cst_11 : f32 to vector<8x128xf32>
    %16 = arith.maximumf %14, %15 : vector<8x128xf32>
    %17 = arith.truncf %16 : vector<8x128xf32> to vector<8x128xbf16>
    %c0_12 = arith.constant 0 : index
    %c0_13 = arith.constant 0 : index
    %18 = vector.load %arg6[%c0_12, %c0_13] : memref<128x4xbf16, #tpu.memory_space<vmem>>, vector<128x4xbf16>
    %cst_14 = arith.constant dense<0.000000e+00> : vector<8x4xf32>
    %19 = tpu.matmul %17, %18, %cst_14 {dimension_numbers = #tpu.dot_dimension_numbers<[1], [0], [0], [1], [0, 0, 1, 1], [], []>} : vector<8x128xbf16>, vector<128x4xbf16>, vector<8x4xf32> -> vector<8x4xf32>
    %c0_15 = arith.constant 0 : index
    %c0_16 = arith.constant 0 : index
    %20 = vector.load %arg7[%c0_15, %c0_16] : memref<1x4xf32, #tpu.memory_space<vmem>>, vector<1x4xf32>
    %21 = vector.broadcast %20 : vector<1x4xf32> to vector<8x4xf32>
    %22 = arith.addf %19, %21 : vector<8x4xf32>
    %23 = math.tanh %22 : vector<8x4xf32>
    %c0_17 = arith.constant 0 : index
    %c0_18 = arith.constant 0 : index
    %24 = vector.load %arg8[%c0_17, %c0_18] : memref<8x4xf32, #tpu.memory_space<vmem>>, vector<8x4xf32>
    tpu.vector_store %arg8[%c0_17, %c0_18], %23 {strides = array<i32>} : memref<8x4xf32, #tpu.memory_space<vmem>>, vector<8x4xf32>,
    return
  }
  func.func @transform_0(%arg0: i32) -> (i32, i32) {
    %c0_i32 = arith.constant 0 : i32
    %c0_i32_0 = arith.constant 0 : i32
    return %arg0, %c0_i32 : i32, i32
  }
  func.func @transform_1(%arg0: i32) -> (i32, i32) {
    %c0_i32 = arith.constant 0 : i32
    %c0_i32_0 = arith.constant 0 : i32
    %c0_i32_1 = arith.constant 0 : i32
    return %c0_i32, %c0_i32_0 : i32, i32
  }
  func.func @transform_2(%arg0: i32) -> (i32, i32) {
    %c0_i32 = arith.constant 0 : i32
    %c0_i32_0 = arith.constant 0 : i32
    %c0_i32_1 = arith.constant 0 : i32
    return %c0_i32, %c0_i32_0 : i32, i32
  }
  func.func @transform_3(%arg0: i32) -> (i32, i32) {
    %c0_i32 = arith.constant 0 : i32
    %c0_i32_0 = arith.constant 0 : i32
    %c0_i32_1 = arith.constant 0 : i32
    return %c0_i32, %c0_i32_0 : i32, i32
  }
  func.func @transform_4(%arg0: i32) -> (i32, i32) {
    %c0_i32 = arith.constant 0 : i32
    %c0_i32_0 = arith.constant 0 : i32
    %c0_i32_1 = arith.constant 0 : i32
    return %c0_i32, %c0_i32_0 : i32, i32
  }
  func.func @transform_5(%arg0: i32) -> (i32, i32) {
    %c0_i32 = arith.constant 0 : i32
    %c0_i32_0 = arith.constant 0 : i32
    %c0_i32_1 = arith.constant 0 : i32
    return %c0_i32, %c0_i32_0 : i32, i32
  }
  func.func @transform_6(%arg0: i32) -> (i32, i32) {
    %c0_i32 = arith.constant 0 : i32
    %c0_i32_0 = arith.constant 0 : i32
    %c0_i32_1 = arith.constant 0 : i32
    return %c0_i32, %c0_i32_0 : i32, i32
  }
  func.func @transform_7(%arg0: i32) -> (i32, i32) {
    %c0_i32 = arith.constant 0 : i32
    %c0_i32_0 = arith.constant 0 : i32
    return %arg0, %c0_i32 : i32, i32
  }
}

</mosaic_0001>

<bundles_post_ra>
// kernel: mlp_policy_forward.1
= control target key start
LH: loop header
LB: loop body
LE: loop exit
PB: predicated region body
PF: predicated region fallthrough
CT: control target
= control target key end

     0   :  { %vm41_vm0 = vcmask 1043456   ;;  %v424_v0 = vmov 0.0   ;;  %vm425_vm1 = vmmov 0   ;;  %vm37_vm2 = vcmask 64512   ;;  %s555_s1 = inlined_call_operand.vmem [shape: bf16[8,128], index: 1, kind: input, shape index: {}]   ;;  %s556_s0 = inlined_call_operand.vmem [shape: f32[8,8], index: 0, kind: input, shape index: {}]   ;;  %s557_s3 = inlined_call_operand.vmem [shape: bf16[128,128], index: 3, kind: input, shape index: {}]   ;;  %s558_s5 = inlined_call_operand.vmem [shape: bf16[128,4], index: 5, kind: input, shape index: {}]   ;;  %s559_s2 = inlined_call_operand.vmem [shape: f32[1,128], index: 2, kind: input, shape index: {}]   ;;  %s560_s4 = inlined_call_operand.vmem [shape: f32[1,128], index: 4, kind: input, shape index: {}]   ;;  %s561_s6 = inlined_call_operand.vmem [shape: f32[1,4], index: 6, kind: input, shape index: {}]   ;;  %s562_s7 = inlined_call_operand.vmem [shape: f32[8,4], index: 7, kind: output, shape index: {}]  }
   0x1   :  { %358 = vmatprep.subr.bf16.mxu0 %v424_v0  ;;  %v29_v1 = vld [vmem:[%s555_s1] sm:$0xf]  ;;  %360 = vmatprep.mubr.msk.bf16.mxu0 %vm425_vm1, %v424_v0  ;;  %v407_v6 = vld [vmem:[%s557_s3 + $0x8] sm:$0xff]   ;;  %v408_v7 = vld [vmem:[%s557_s3 + $0x10] sm:$0xff]   ;;  %vm312_vm3 = vcmask 31744  }
   0x2   :  { %v27_v2 = vld [vmem:[%s556_s0] sm:$0xff]  ;;  %v43_v3 = vsel %vm41_vm0, %v29_v1, 0  ;;  %364 = vmatprep.subr.bf16.mxu1 %v424_v0  ;;  %380 = vmatprep.mubr.msk.bf16.mxu1 %vm425_vm1, %v424_v0  ;;  %v409_v8 = vld [vmem:[%s557_s3 + $0x18] sm:$0xff]   ;;  %v411_v10 = vld [vmem:[%s557_s3 + $0x28] sm:$0xff]  }
   0x3   :  { %v28_v4 = vpack.c.bf16 %v27_v2, %v27_v2  ;;  %v406_v5 = vld [vmem:[%s557_s3] sm:$0xff]   ;;  %359 = vmatpush3.bf16.msra.mxu0 %v43_v3  ;;  %v412_v11 = vld [vmem:[%s557_s3 + $0x30] sm:$0xff]   ;;  %v413_v12 = vld [vmem:[%s557_s3 + $0x38] sm:$0xff]  }
   0x4   :  { %365 = vmatpush3.bf16.msra.mxu1 %v406_v5  ;;  %384 = vmatprep.subr.bf16.mxu0 %v424_v0  ;;  %v410_v9 = vld [vmem:[%s557_s3 + $0x20] sm:$0xff]   ;;  %v415_v14 = vld [vmem:[%s558_s5 + $0x8] sm:$0xff]   ;;  %v416_v15 = vld [vmem:[%s558_s5 + $0x10] sm:$0xff]  }
   0x5   :  { %366 = vmatprep.subr.bf16.mxu1 %v424_v0  ;;  %v414_v13 = vld [vmem:[%s558_s5] sm:$0xff]   ;;  %v417_v16 = vld [vmem:[%s558_s5 + $0x18] sm:$0xff]   ;;  %v419_v18 = vld [vmem:[%s558_s5 + $0x28] sm:$0xff]  }
   0x6   :  { %361 = vmatmul.mubr.msk.bf16.vlgmr.msra.gmra.mrb[0].mxu0 %vm37_vm2, %v28_v4  ;;  %v418_v17 = vld [vmem:[%s558_s5 + $0x20] sm:$0xff]   ;;  %v420_v27 = vld [vmem:[%s558_s5 + $0x30] sm:$0xff]   ;;  %v421_v28 = vld [vmem:[%s558_s5 + $0x38] sm:$0xff]  }
   0x7   :  { %400 = vmatprep.mubr.msk.bf16.mxu0 %vm425_vm1, %v424_v0  ;;  %385 = vmatpush3.bf16.msra.mxu0 %v414_v13  ;;  %v318_v19 = vld [vmem:[%s559_s2] ss:$0 sm:$0xff] }
   0x8   :  { %367 = vmatpush3.bf16.msra.mxu1 %v407_v6  ;;  %386 = vmatprep.subr.bf16.mxu0 %v424_v0  ;;  %v320_v29 = vld [vmem:[%s560_s4] ss:$0 sm:$0xff] }
   0x9   :  { %368 = vmatprep.subr.bf16.mxu1 %v424_v0  ;;  %v329_v37 = vld [vmem:[%s561_s6] ss:$0 sm:$0xff] }
   0xb   :  { %387 = vmatpush3.bf16.msra.mxu0 %v415_v14 }
   0xc   :  { %369 = vmatpush3.bf16.msra.mxu1 %v408_v7  ;;  %388 = vmatprep.subr.bf16.mxu0 %v424_v0 }
   0xd   :  { %370 = vmatprep.subr.bf16.mxu1 %v424_v0 }
   0xf   :  { %389 = vmatpush3.bf16.msra.mxu0 %v416_v15 }
  0x10   :  { %371 = vmatpush3.bf16.msra.mxu1 %v409_v8  ;;  %390 = vmatprep.subr.bf16.mxu0 %v424_v0 }
  0x11   :  { %372 = vmatprep.subr.bf16.mxu1 %v424_v0 }
  0x13   :  { %391 = vmatpush3.bf16.msra.mxu0 %v417_v16 }
  0x14   :  { %373 = vmatpush3.bf16.msra.mxu1 %v410_v9  ;;  %392 = vmatprep.subr.bf16.mxu0 %v424_v0 }
  0x15   :  { %374 = vmatprep.subr.bf16.mxu1 %v424_v0 }
  0x17   :  { %393 = vmatpush3.bf16.msra.mxu0 %v418_v17 }
  0x18   :  { %375 = vmatpush3.bf16.msra.mxu1 %v411_v10  ;;  %394 = vmatprep.subr.bf16.mxu0 %v424_v0 }
  0x19   :  { %376 = vmatprep.subr.bf16.mxu1 %v424_v0 }
  0x1b   :  { %395 = vmatpush3.bf16.msra.mxu0 %v419_v18 }
  0x1c   :  { %377 = vmatpush3.bf16.msra.mxu1 %v412_v11  ;;  %396 = vmatprep.subr.bf16.mxu0 %v424_v0 }
  0x1d   :  { %378 = vmatprep.subr.bf16.mxu1 %v424_v0 }
  0x1f   :  { %397 = vmatpush3.bf16.msra.mxu0 %v420_v27 }
  0x20   :  { %379 = vmatpush3.bf16.msra.mxu1 %v413_v12  ;;  %398 = vmatprep.subr.bf16.mxu0 %v424_v0 }
  0x23   :  { %399 = vmatpush3.bf16.msra.mxu0 %v421_v28 }
  0xd9   :  { %v79_v20 = vpop.f32.mrb[0].mxu0 }
  0xda   :  { %v80_v21 = vadd.f32 %v318_v19, %v79_v20  ;;  %v362_v22 = vpop.f32.mrb[1].mxu0 }
  0xdb   :  { %v82_v23 = vpop.f32.mrb[2].mxu0 }
  0xdc   :  { %v85_v24 = vmax.f32 %v80_v21, 0.0  ;;  %v363_v25 = vpop.f32.mrb[3].mxu0 }
  0xde   :  { %v86_v26 = vpack.c.bf16 %v85_v24, %v85_v24 }
  0xe0   :  { %381 = vmatmul.mubr.bf16.vlgmr.msra.gmra.mrb[0].mxu1 %v86_v26 }
 0x1b3   :  { %v192_v30 = vpop.f32.mrb[0].mxu1 }
 0x1b4   :  { %v193_v31 = vadd.f32 %v320_v29, %v192_v30  ;;  %v382_v32 = vpop.f32.mrb[1].mxu1 }
 0x1b5   :  { %v195_v33 = vpop.f32.mrb[2].mxu1 }
 0x1b6   :  { %v198_v34 = vmax.f32 %v193_v31, 0.0  ;;  %v383_v35 = vpop.f32.mrb[3].mxu1 }
 0x1b8   :  { %v199_v36 = vpack.c.bf16 %v198_v34, %v198_v34 }
 0x1ba   :  { %401 = vmatmul.mubr.bf16.vlgmr.msra.gmra.mrb[4].mxu0 %v199_v36 }
 0x28d   :  { %v305_v38 = vpop.f32.mrb[4].mxu0 }
 0x28e   :  { %v306_v39 = vadd.f32 %v329_v37, %v305_v38  ;;  %v402_v40 = vpop.f32.mrb[5].mxu0 }
 0x28f   :  { %v308_v41 = vpop.f32.mrb[6].mxu0 }
 0x290   :  { %422 = vtanh.f32 %v306_v39  ;;  %v403_v42 = vpop.f32.mrb[7].mxu0 }
 0x29a   :  { %v423_v43 = vpop.eup %422 }
 0x29b   :  { %313 = vst.msk [vmem:[%s562_s7] sm:$0xff] %vm312_vm3, %v423_v43 }

</bundles_post_ra>
